<compile_context>
chip_gen: v5e
topology: v5e:2x2
jax: 0.10.0
libtpu: 0.0.40
codegen_flags: <defaults>
</compile_context>

<pallas_src>
import jax
import jax.numpy as jnp
from jax.experimental import pallas as pl
from jax.experimental.pallas import tpu as pltpu


def _round_up(x, m):
    return (x + m - 1) // m * m


def _make_rnn_seq_kernel(h_pad, batch, b_tile):
    """Build the per-(batch-block, time-step) kernel body.

    h_pad  : static lane-padded hidden width (columns [0:h_pad) of the fused
             projection carry the new hidden state, [h_pad:) carry the logits).
    batch  : static number of valid batch rows (for masking pad rows).
    b_tile : static batch-block height.
    """

    def kernel(x_ref, h0_ref, wx_ref, wh_ref, b_ref, y_ref, hT_ref, h_carry):
        # x_ref  : (1, Bt, E)    this step's inputs (compute dtype)
        # h0_ref : (Bt, Hp)      initial hidden, padded (f32)
        # wx_ref : (E,  Hp+V)    fused weight, inputs part  (f32 or bf16, resident)
        # wh_ref : (Hp, Hp+V)    fused weight, hidden part  (f32 or bf16, resident)
        # b_ref  : (1,  Hp+V)    fused bias (f32, resident)
        # y_ref  : (1, Bt, V)    this step's log-probs (f32)
        # hT_ref : (Bt, Hp)      final hidden (f32, written at last step)
        # h_carry: (Bt, Hp)      VMEM scratch hidden carry across the T axis (f32)
        nb = pl.program_id(0)
        t = pl.program_id(1)

        @pl.when(t == 0)
        def _():
            h_carry[...] = h0_ref[...]

        cd = wx_ref.dtype
        x = x_ref[0]                          # (Bt, E), already in compute dtype
        h = h_carry[...].astype(cd)           # tiny per-step cast keeps the
                                              # recurrence carried in f32

        # y = [x | h] @ W_fused + b : two MXU dots sharing one f32 accumulator
        # (hidden and output projections computed together).
        y = (jnp.dot(x, wx_ref[...], preferred_element_type=jnp.float32)
             + jnp.dot(h, wh_ref[...], preferred_element_type=jnp.float32)
             + b_ref[...])

        hid = y[:, :h_pad]        # new hidden (cols H..Hp are structurally zero)
        logits = y[:, h_pad:]     # output logits

        # Zero the padded batch rows so they never recurse (bias-only garbage)
        # through W_h across many steps.
        row = jax.lax.broadcasted_iota(jnp.int32, (b_tile, 1), 0)
        valid = jnp.int32(batch) - nb * b_tile
        h_carry[...] = jnp.where(row < valid, hid, 0.0)

        # Numerically stable log-softmax along dim=1 (f32; exp/log on the EUP).
        m = jnp.max(logits, axis=1, keepdims=True)
        shifted = logits - m
        lse = jnp.log(jnp.sum(jnp.exp(shifted), axis=1, keepdims=True))
        y_ref[0] = (shifted - lse).astype(y_ref.dtype)

        @pl.when(t == pl.num_programs(1) - 1)
        def _():
            hT_ref[...] = h_carry[...]

    return kernel


def prepare_params(params, embed_dim, hidden_size, vocab_dim,
                   compute_dtype=jnp.float32, hp_align=128):
    """One-time weight prep (hoisted out of the forward).

    params: w_h (H, E+H), b_h (H,), w_o (V, E+H), b_o (V,)  — nn.Linear layout.
    Returns fused, transposed, lane-padded weights:
        wx (E,  Hp+V), wh (Hp, Hp+V), b (1, Hp+V)  with Hp = H rounded up to
        `hp_align` (128; use 256 to fill the 256-wide v6e/v7x MXU for large H).
    compute_dtype=jnp.bfloat16 halves weight/activation DMA bytes; fine on
    v5e/v6e/v7x (MXU takes bf16 natively; accumulation stays f32).
    """
    E, H, V = embed_dim, hidden_size, vocab_dim
    Hp = _round_up(max(H, hp_align), hp_align)
    N = Hp + V

    w_h, w_o = params["w_h"], params["w_o"]
    wx = jnp.zeros((E, N), jnp.float32)
    wx = wx.at[:, :H].set(w_h[:, :E].T).at[:, Hp:].set(w_o[:, :E].T)
    wh = jnp.zeros((Hp, N), jnp.float32)                 # zero rows H..Hp
    wh = wh.at[:H, :H].set(w_h[:, E:].T).at[:H, Hp:].set(w_o[:, E:].T)
    b = jnp.zeros((1, N), jnp.float32)
    b = b.at[0, :H].set(params["b_h"]).at[0, Hp:].set(params["b_o"])

    return {
        "wx": wx.astype(compute_dtype),
        "wh": wh.astype(compute_dtype),
        "b": b,                               # bias stays f32 (added post-accum)
        "h_pad": Hp,
        "embed_dim": E,
        "hidden_size": H,
        "vocab_dim": V,
        "compute_dtype": jnp.dtype(compute_dtype),
    }


def rnn_forward(xs, h0, prepared):
    """Run the RNN over a whole sequence in ONE pallas_call.

    xs: (T, B, E) inputs, h0: (B, H) initial hidden.
    Returns (log_probs (T, B, V), final_hidden (B, H)).
    """
    T, B, E = xs.shape
    H = prepared["hidden_size"]
    V = prepared["vocab_dim"]
    Hp = prepared["h_pad"]
    cd = prepared["compute_dtype"]
    N = Hp + V
    itemsize = jnp.dtype(cd).itemsize

    # Pad the batch to the sublane height for the compute dtype (8 for f32,
    # 16 for packed bf16); tile it in blocks of 128 if it is large (the leading
    # "parallel" grid axis then shards across the two v7x TensorCores).
    sub = 8 * 4 // itemsize
    Bp = _round_up(max(B, sub), sub)
    if Bp > 128:
        Bp = _round_up(Bp, 128)
        b_tile = 128
    else:
        b_tile = Bp
    nb = Bp // b_tile

    # One-time padding / casting (NOT per step).
    xs_p = xs.astype(cd)
    if Bp != B:
        xs_p = jnp.pad(xs_p, ((0, 0), (0, Bp - B), (0, 0)))
    h0_p = jnp.zeros((Bp, Hp), jnp.float32).at[:B, :H].set(h0.astype(jnp.float32))

    # VMEM budget: weights (resident) + double-buffered per-step I/O + hidden
    # blocks + scratch carry.  Cap at 48 MiB — leaves headroom on v7x (64 MiB
    # physical per TensorCore); comfortably below v5e/v6e's 128 MiB.
    w_bytes = (E * N + Hp * N) * itemsize + N * 4
    io_bytes = 2 * (b_tile * E * itemsize + b_tile * V * 4)
    h_bytes = 4 * (b_tile * Hp * 4)
    scratch_bytes = b_tile * Hp * 4
    est = 2 * w_bytes + io_bytes + h_bytes + scratch_bytes
    assert est < (48 << 20), (
        "fused weights/activations exceed the VMEM budget; tile the Hp+V axis "
        "with an online log-softmax for large vocab sizes")
    vmem_limit = min(max(2 * est, 16 << 20), 48 << 20)

    kernel = _make_rnn_seq_kernel(Hp, B, b_tile)

    log_probs, h_final = pl.pallas_call(
        kernel,
        out_shape=(
            jax.ShapeDtypeStruct((T, Bp, V), jnp.float32),
            jax.ShapeDtypeStruct((Bp, Hp), jnp.float32),
        ),
        grid_spec=pltpu.PrefetchScalarGridSpec(
            num_scalar_prefetch=0,
            grid=(nb, T),
            in_specs=[
                # per-step inputs, tiled along the time grid axis
                pl.BlockSpec((1, b_tile, E), lambda b, t: (t, b, 0)),
                # initial hidden: constant across t (loaded once per batch block)
                pl.BlockSpec((b_tile, Hp), lambda b, t: (b, 0)),
                # fused weights / bias: constant index maps -> resident in VMEM
                pl.BlockSpec((E, N), lambda b, t: (0, 0)),
                pl.BlockSpec((Hp, N), lambda b, t: (0, 0)),
                pl.BlockSpec((1, N), lambda b, t: (0, 0)),
            ],
            out_specs=[
                pl.BlockSpec((1, b_tile, V), lambda b, t: (t, b, 0)),
                pl.BlockSpec((b_tile, Hp), lambda b, t: (b, 0)),
            ],
            scratch_shapes=[pltpu.VMEM((b_tile, Hp), jnp.float32)],
        ),
        compiler_params=pltpu.CompilerParams(
            dimension_semantics=("parallel", "arbitrary"),
            vmem_limit_bytes=vmem_limit,
        ),
    )(xs_p, h0_p, prepared["wx"], prepared["wh"], prepared["b"])

    return log_probs[:, :B, :], h_final[:B, :H]


def rnn_cell_forward(inputs, hidden, prepared):
    """Single RNNCell step (matches the PyTorch module's forward signature).
    Returns (log_probs (B, V), new_hidden (B, H))."""
    outs, h_new = rnn_forward(inputs[None], hidden, prepared)
    return outs[0], h_new


def init_params(key, embed_dim, hidden_size, vocab_dim):
    """Deterministic init mimicking nn.Linear (uniform +/- 1/sqrt(fan_in))."""
    k1, k2, k3, k4 = jax.random.split(key, 4)
    fan_in = embed_dim + hidden_size
    bound = 1.0 / jnp.sqrt(fan_in)
    return {
        "w_h": jax.random.uniform(k1, (hidden_size, fan_in), jnp.float32, -bound, bound),
        "b_h": jax.random.uniform(k2, (hidden_size,), jnp.float32, -bound, bound),
        "w_o": jax.random.uniform(k3, (vocab_dim, fan_in), jnp.float32, -bound, bound),
        "b_o": jax.random.uniform(k4, (vocab_dim,), jnp.float32, -bound, bound),
    }


def reference_forward(inputs, hidden, params):
    """Pure-JAX reference matching the PyTorch module (one step)."""
    combined = jnp.concatenate([inputs, hidden], axis=1)
    hid = combined @ params["w_h"].T + params["b_h"]
    logits = combined @ params["w_o"].T + params["b_o"]
    out = jax.nn.log_softmax(logits, axis=1)
    return out, hid


if __name__ == "__main__":
    batch = 2
    embed_dim = 32
    hidden_size = 32
    vocab_dim = 128
    seq_len = 8

    key = jax.random.PRNGKey(0)
    kx, kh, kp = jax.random.split(key, 3)

    xs = jax.random.normal(kx, (seq_len, batch, embed_dim), jnp.float32)
    h0 = jax.random.normal(kh, (batch, hidden_size), jnp.float32)
    params = init_params(kp, embed_dim, hidden_size, vocab_dim)

    # Pure-JAX reference: one module step scanned over the sequence.
    def ref_step(h, x):
        out, h_new = reference_forward(x, h, params)
        return h_new, out

    ref_hT, ref_outs = jax.lax.scan(ref_step, h0, xs)

    # --- f32 weight path, full-sequence fused call -------------------------
    prep_f32 = prepare_params(params, embed_dim, hidden_size, vocab_dim,
                              compute_dtype=jnp.float32, hp_align=128)
    outs, hT = rnn_forward(xs, h0, prep_f32)
    jax.block_until_ready((outs, hT))
    assert jnp.allclose(outs, ref_outs, atol=1e-4, rtol=1e-4), "f32 seq output mismatch"
    assert jnp.allclose(hT, ref_hT, atol=1e-4, rtol=1e-4), "f32 seq hidden mismatch"

    # --- single-step call (exact module forward semantics) -----------------
    out1, h1 = rnn_cell_forward(xs[0], h0, prep_f32)
    ref1, ref_h1 = reference_forward(xs[0], h0, params)
    jax.block_until_ready((out1, h1))
    assert jnp.allclose(out1, ref1, atol=1e-5, rtol=1e-5), "f32 step output mismatch"
    assert jnp.allclose(h1, ref_h1, atol=1e-5, rtol=1e-5), "f32 step hidden mismatch"

    # --- bf16 weights + activations, Hp aligned to 256 (v6e/v7x MXU width) --
    # (also valid on v5e: its MXU takes bf16 operands; accumulation stays f32)
    prep_bf16 = prepare_params(params, embed_dim, hidden_size, vocab_dim,
                               compute_dtype=jnp.bfloat16, hp_align=256)
    outs_bf, hT_bf = rnn_forward(xs, h0, prep_bf16)
    jax.block_until_ready((outs_bf, hT_bf))
    assert jnp.allclose(outs_bf, ref_outs, atol=5e-2, rtol=5e-2), "bf16 output mismatch"
    assert jnp.allclose(hT_bf, ref_hT, atol=5e-2, rtol=5e-2), "bf16 hidden mismatch"

    print("KERNEL_OK")
</pallas_src>

<mosaic_0001>
module attributes {stable_mosaic.version = 11 : i64} {
  func.func @kernel(%arg0: i32, %arg1: i32, %arg2: memref<1x8x32xf32, #tpu.memory_space<vmem>>, %arg3: memref<8x128xf32, #tpu.memory_space<vmem>>, %arg4: memref<32x256xf32, #tpu.memory_space<vmem>>, %arg5: memref<128x256xf32, #tpu.memory_space<vmem>>, %arg6: memref<1x256xf32, #tpu.memory_space<vmem>>, %arg7: memref<1x8x128xf32, #tpu.memory_space<vmem>>, %arg8: memref<8x128xf32, #tpu.memory_space<vmem>>, %arg9: memref<8x128xf32, #tpu.memory_space<vmem>>) attributes {dimension_semantics = [#tpu.dimension_semantics<parallel>, #tpu.dimension_semantics<arbitrary>], iteration_bounds = array<i64: 1, 8>, scalar_prefetch = 0 : i64, scratch_operands = 1 : i64, tpu.core_type = #tpu.core_type<tc>, window_params = [{transform_indices = @transform_0, window_bounds = array<i64: 1, 8, 32>}, {transform_indices = @transform_1, window_bounds = array<i64: 8, 128>}, {pipeline_mode = #tpu.pipeline_mode<synchronous>, transform_indices = @transform_2, window_bounds = array<i64: 32, 256>}, {pipeline_mode = #tpu.pipeline_mode<synchronous>, transform_indices = @transform_3, window_bounds = array<i64: 128, 256>}, {pipeline_mode = #tpu.pipeline_mode<synchronous>, transform_indices = @transform_4, window_bounds = array<i64: 1, 256>}, {transform_indices = @transform_5, window_bounds = array<i64: 1, 8, 128>}, {transform_indices = @transform_6, window_bounds = array<i64: 8, 128>}]} {
    %c0_i32 = arith.constant 0 : i32
    %0 = arith.cmpi eq, %arg1, %c0_i32 : i32
    %1 = arith.extui %0 : i1 to i32
    %c0_i32_0 = arith.constant 0 : i32
    %2 = arith.cmpi ne, %1, %c0_i32_0 : i32
    scf.if %2 {
      %c0_21 = arith.constant 0 : index
      %c0_22 = arith.constant 0 : index
      %42 = vector.load %arg3[%c0_21, %c0_22] : memref<8x128xf32, #tpu.memory_space<vmem>>, vector<8x128xf32>
      %c0_23 = arith.constant 0 : index
      %c0_24 = arith.constant 0 : index
      %43 = vector.load %arg9[%c0_23, %c0_24] : memref<8x128xf32, #tpu.memory_space<vmem>>, vector<8x128xf32>
      tpu.vector_store %arg9[%c0_23, %c0_24], %42 {strides = array<i32>} : memref<8x128xf32, #tpu.memory_space<vmem>>, vector<8x128xf32>,
    } else {
    }
    %c0 = arith.constant 0 : index
    %c0_1 = arith.constant 0 : index
    %c0_2 = arith.constant 0 : index
    %3 = vector.load %arg2[%c0, %c0_1, %c0_2] : memref<1x8x32xf32, #tpu.memory_space<vmem>>, vector<1x8x32xf32>
    %4 = vector.shape_cast %3 : vector<1x8x32xf32> to vector<8x32xf32>
    %c0_3 = arith.constant 0 : index
    %c0_4 = arith.constant 0 : index
    %5 = vector.load %arg9[%c0_3, %c0_4] : memref<8x128xf32, #tpu.memory_space<vmem>>, vector<8x128xf32>
    %c0_5 = arith.constant 0 : index
    %c0_6 = arith.constant 0 : index
    %6 = vector.load %arg4[%c0_5, %c0_6] : memref<32x256xf32, #tpu.memory_space<vmem>>, vector<32x256xf32>
    %cst = arith.constant dense<0.000000e+00> : vector<8x256xf32>
    %7 = tpu.matmul %4, %6, %cst {dimension_numbers = #tpu.dot_dimension_numbers<[1], [0], [0], [1], [0, 0, 1, 1], [], []>} : vector<8x32xf32>, vector<32x256xf32>, vector<8x256xf32> -> vector<8x256xf32>
    %c0_7 = arith.constant 0 : index
    %c0_8 = arith.constant 0 : index
    %8 = vector.load %arg5[%c0_7, %c0_8] : memref<128x256xf32, #tpu.memory_space<vmem>>, vector<128x256xf32>
    %cst_9 = arith.constant dense<0.000000e+00> : vector<8x256xf32>
    %9 = tpu.matmul %5, %8, %cst_9 {dimension_numbers = #tpu.dot_dimension_numbers<[1], [0], [0], [1], [0, 0, 1, 1], [], []>} : vector<8x128xf32>, vector<128x256xf32>, vector<8x256xf32> -> vector<8x256xf32>
    %10 = arith.addf %7, %9 : vector<8x256xf32>
    %c0_10 = arith.constant 0 : index
    %c0_11 = arith.constant 0 : index
    %11 = vector.load %arg6[%c0_10, %c0_11] : memref<1x256xf32, #tpu.memory_space<vmem>>, vector<1x256xf32>
    %12 = vector.broadcast %11 : vector<1x256xf32> to vector<8x256xf32>
    %13 = arith.addf %10, %12 : vector<8x256xf32>
    %14 = vector.extract_strided_slice %13 {offsets = [0, 0], sizes = [8, 128], strides = [1, 1]} : vector<8x256xf32> to vector<8x128xf32>
    %15 = vector.extract_strided_slice %13 {offsets = [0, 128], sizes = [8, 128], strides = [1, 1]} : vector<8x256xf32> to vector<8x128xf32>
    %16 = tpu.iota {dimensions = array<i32: 0>} : vector<8x1xi32>
    %c8_i32 = arith.constant 8 : i32
    %17 = arith.muli %arg0, %c8_i32 : i32
    %c2_i32 = arith.constant 2 : i32
    %18 = arith.subi %c2_i32, %17 : i32
    %19 = vector.broadcast %18 : i32 to vector<8x1xi32>
    %20 = arith.cmpi slt, %16, %19 : vector<8x1xi32>
    %cst_12 = arith.constant 0.000000e+00 : f32
    %21 = vector.shape_cast %20 : vector<8x1xi1> to vector<8x1xi1>
    %22 = vector.broadcast %21 : vector<8x1xi1> to vector<8x128xi1>
    %23 = vector.broadcast %cst_12 : f32 to vector<8x128xf32>
    %24 = arith.select %22, %14, %23 : vector<8x128xi1>, vector<8x128xf32>
    %c0_13 = arith.constant 0 : index
    %c0_14 = arith.constant 0 : index
    %25 = vector.load %arg9[%c0_13, %c0_14] : memref<8x128xf32, #tpu.memory_space<vmem>>, vector<8x128xf32>
    tpu.vector_store %arg9[%c0_13, %c0_14], %24 {strides = array<i32>} : memref<8x128xf32, #tpu.memory_space<vmem>>, vector<8x128xf32>,
    %cst_15 = arith.constant dense<0xFF800000> : vector<8xf32>
    %26 = vector.multi_reduction <maximumf>, %15, %cst_15 [1] : vector<8x128xf32> to vector<8xf32>
    %27 = vector.shape_cast %26 : vector<8xf32> to vector<8x1xf32>
    %28 = vector.broadcast %27 : vector<8x1xf32> to vector<8x128xf32>
    %29 = arith.subf %15, %28 : vector<8x128xf32>
    %30 = math.exp %29 : vector<8x128xf32>
    %cst_16 = arith.constant dense<0.000000e+00> : vector<8xf32>
    %31 = vector.multi_reduction <add>, %30, %cst_16 [1] : vector<8x128xf32> to vector<8xf32>
    %32 = vector.shape_cast %31 : vector<8xf32> to vector<8x1xf32>
    %33 = math.log %32 : vector<8x1xf32>
    %34 = vector.broadcast %33 : vector<8x1xf32> to vector<8x128xf32>
    %35 = arith.subf %29, %34 : vector<8x128xf32>
    %c0_17 = arith.constant 0 : index
    %c0_18 = arith.constant 0 : index
    %c0_19 = arith.constant 0 : index
    %36 = vector.load %arg7[%c0_17, %c0_18, %c0_19] : memref<1x8x128xf32, #tpu.memory_space<vmem>>, vector<1x8x128xf32>
    %37 = vector.shape_cast %36 : vector<1x8x128xf32> to vector<8x128xf32>
    %38 = vector.shape_cast %35 : vector<8x128xf32> to vector<1x8x128xf32>
    tpu.vector_store %arg7[%c0_17, %c0_18, %c0_19], %38 {strides = array<i32>} : memref<1x8x128xf32, #tpu.memory_space<vmem>>, vector<1x8x128xf32>,
    %c7_i32 = arith.constant 7 : i32
    %39 = arith.cmpi eq, %arg1, %c7_i32 : i32
    %40 = arith.extui %39 : i1 to i32
    %c0_i32_20 = arith.constant 0 : i32
    %41 = arith.cmpi ne, %40, %c0_i32_20 : i32
    scf.if %41 {
      %c0_21 = arith.constant 0 : index
      %c0_22 = arith.constant 0 : index
      %42 = vector.load %arg9[%c0_21, %c0_22] : memref<8x128xf32, #tpu.memory_space<vmem>>, vector<8x128xf32>
      %c0_23 = arith.constant 0 : index
      %c0_24 = arith.constant 0 : index
      %43 = vector.load %arg8[%c0_23, %c0_24] : memref<8x128xf32, #tpu.memory_space<vmem>>, vector<8x128xf32>
      tpu.vector_store %arg8[%c0_23, %c0_24], %42 {strides = array<i32>} : memref<8x128xf32, #tpu.memory_space<vmem>>, vector<8x128xf32>,
    } else {
    }
    return
  }
  func.func @transform_0(%arg0: i32, %arg1: i32) -> (i32, i32, i32) {
    %c0_i32 = arith.constant 0 : i32
    %c0_i32_0 = arith.constant 0 : i32
    return %arg1, %arg0, %c0_i32 : i32, i32, i32
  }
  func.func @transform_1(%arg0: i32, %arg1: i32) -> (i32, i32) {
    %c0_i32 = arith.constant 0 : i32
    %c0_i32_0 = arith.constant 0 : i32
    return %arg0, %c0_i32 : i32, i32
  }
  func.func @transform_2(%arg0: i32, %arg1: i32) -> (i32, i32) {
    %c0_i32 = arith.constant 0 : i32
    %c0_i32_0 = arith.constant 0 : i32
    %c0_i32_1 = arith.constant 0 : i32
    return %c0_i32, %c0_i32_0 : i32, i32
  }
  func.func @transform_3(%arg0: i32, %arg1: i32) -> (i32, i32) {
    %c0_i32 = arith.constant 0 : i32
    %c0_i32_0 = arith.constant 0 : i32
    %c0_i32_1 = arith.constant 0 : i32
    return %c0_i32, %c0_i32_0 : i32, i32
  }
  func.func @transform_4(%arg0: i32, %arg1: i32) -> (i32, i32) {
    %c0_i32 = arith.constant 0 : i32
    %c0_i32_0 = arith.constant 0 : i32
    %c0_i32_1 = arith.constant 0 : i32
    return %c0_i32, %c0_i32_0 : i32, i32
  }
  func.func @transform_5(%arg0: i32, %arg1: i32) -> (i32, i32, i32) {
    %c0_i32 = arith.constant 0 : i32
    %c0_i32_0 = arith.constant 0 : i32
    return %arg1, %arg0, %c0_i32 : i32, i32, i32
  }
  func.func @transform_6(%arg0: i32, %arg1: i32) -> (i32, i32) {
    %c0_i32 = arith.constant 0 : i32
    %c0_i32_0 = arith.constant 0 : i32
    return %arg0, %c0_i32 : i32, i32
  }
}

</mosaic_0001>

<bundles_post_ra>
// kernel: tpu_custom_call.1
= control target key start
LH: loop header
LB: loop body
LE: loop exit
PB: predicated region body
PF: predicated region fallthrough
CT: control target
= control target key end

     0   :  { %s1277_s0 = inlined_call_operand.hbm [shape: f32[8,8,32], index: 0, kind: input, shape index: {}]   ;;  %s1278_s1 = inlined_call_operand.hbm [shape: f32[8,128], index: 1, kind: input, shape index: {}]   ;;  %s1279_s2 = inlined_call_operand.hbm [shape: f32[32,256], index: 2, kind: input, shape index: {}]   ;;  %s1280_s3 = inlined_call_operand.hbm [shape: f32[128,256], index: 3, kind: input, shape index: {}]   ;;  %s1281_s4 = inlined_call_operand.vmem [shape: f32[1,256], index: 4, kind: input, shape index: {}]   ;;  %s1282_s5 = inlined_call_operand.hbm [shape: f32[8,8,128], index: 5, kind: output, shape index: {0}]   ;;  %s1283_s6 = inlined_call_operand.hbm [shape: f32[8,128], index: 6, kind: output, shape index: {1}]  }
   0x1   :  { %1284 = sst [smem:[#allocation19_spill]] %s1278_s1 }
   0x2   :  { %1285 = sst [smem:[#allocation20_spill]] %s1279_s2 }
   0x3   :  { %1286 = sst [smem:[#allocation21_spill]] %s1280_s3 }
   0x4   :  { %12 = vsyncpa [#allocation4], 0 }
   0x5   :  { %14 = vsyncpa [#allocation4 + $0x1], 0 }
   0x6   :  { %15 = vsyncpa [#allocation7], 0 }
   0x7   :  { %16 = vsyncpa [#allocation10], 0 }
   0x8   :  { %17 = vsyncpa [#allocation5], 0 }
   0x9   :  { %19 = vsyncpa [#allocation5 + $0x1], 0 }
   0xa   :  { %20 = vsyncpa [#allocation13], 0  ;;  %s1084_s21 = smov 0   ;;  %s1086_s22 = smov 0  }
   0xb   :  { %s1088_s23 = smov 0   ;;  %s1090_s24 = smov 0  }
   0xc   :  { %s1092_s25 = smov 0   ;;  %s1094_s26 = smov 0  }
   0xd LB: > { %s668_s27 = sadd.s32 4294967295, %s1041_s26   ;;  %s669_s28 = sadd.s32 4294967294, %s1041_s26   ;;  %s1041_s26 = sphi %s1094_s26, %s26_s26   ;;  %s1037_s25 = sphi %s1092_s25, %s1302_s25   ;;  %s1033_s24 = sphi %s1090_s24, %s1301_s24   ;;  %s1029_s23 = sphi %s1088_s23, %s1300_s23   ;;  %s1025_s22 = sphi %s1086_s22, %s1299_s22   ;;  %s1021_s21 = sphi %s1084_s21, %s1298_s21  }
   0xe   : > { %p60_p0 = scmp.ne.s32.totalorder %s1025_s22, %s1021_s21  ;;  %p1118_p1 = scmp.eq.s32.totalorder %s668_s27, 0 }
   0xf   : > { %p1122_p2 = scmp.eq.s32.totalorder %s668_s27, 7  ;;  %p181_p3 = scmp.eq.s32.totalorder %s669_s28, 7 }
  0x10   : > { %p1128_p4 = por %p1118_p1, %p60_p0  ;;  %p670_p5 = scmp.ge.s32.totalorder %s1041_s26, 1 }
  0x11   : > { %p1133_p6 = por %p181_p3, %p60_p0  ;;  %p214_p7 = scmp.lt.s32.totalorder %s1041_s26, 9 }
  0x12   : > { %s1291_s1 = sld [smem:[#allocation19_spill]]  ;;  %s1043_s13 = smov [#allocation6]  }
  0x13   : > { %p1141_p8 = pnand %p670_p5, %p214_p7  ;;  %s230_s14 = sshll.u32 %s1043_s13, 4  ;;  %s231_s14 = int_to_ptr.vmem [resolvable:$true] %s230_s14 }
  0x14   : > { %s1293_s2 = sld [smem:[#allocation20_spill]]  ;;  %s1044_s19 = smov [#allocation8]  }
  0x15   : > { %p713_p9 = pneg %p1141_p8  ;;  %s241_s20 = sshll.u32 %s1044_s19, 4  ;;  %s242_s20 = int_to_ptr.vmem [resolvable:$true] %s241_s20 }
  0x16   : > { %s1045_s27 = smov 256   ;;  %s1046_s28 = smov 16  }
  0x17   : > { %p1152_p10 = pnand %p713_p9, %p1118_p1  ;;  %s1295_s3 = sld [smem:[#allocation21_spill]] }
  0x18   : > { %s228_s11 = sshll.u32 %s1291_s1, 4  ;;  %s1047_s15 = smov [#allocation9]   ;;  %s229_s11 = int_to_ptr.hbm [resolvable:$true] %s228_s11 }
  0x19   : > { %716 = dma.hbm_to_vmem [thread:$0]  (!%p1152_p10), %s229_s11, 128, %s231_s14, [#allocation7]  }
  0x1a   : > { %s239_s17 = sshll.u32 %s1293_s2, 4  ;;  %s255_s16 = sshll.u32 %s1047_s15, 4  ;;  %s240_s17 = int_to_ptr.hbm [resolvable:$true] %s239_s17  ;;  %s256_s16 = int_to_ptr.vmem [resolvable:$true] %s255_s16 }
  0x1b   : > { %719 = dma.hbm_to_vmem [thread:$0]  (!%p1152_p10), %s240_s17, 1024, %s242_s20, [#allocation7], %s1045_s27, %s1045_s27, %s1046_s28  }
  0x1c   : > { %s47_s11 = sadd.s32 1, %s1029_s23  ;;  %s35_s14 = sadd.s32 1, %s1037_s25 }
  0x1d   : > { %s253_s13 = sshll.u32 %s1295_s3, 4  ;;  %p54_p11 = scmp.ne.s32.totalorder %s1029_s23, %s1025_s22  ;;  %s254_s13 = int_to_ptr.hbm [resolvable:$true] %s253_s13 }
  0x1e   : > { %722 = dma.hbm_to_vmem [thread:$0]  (!%p1152_p10), %s254_s13, 4096, %s256_s16, [#allocation10], %s1045_s27, %s1045_s27, %s1046_s28  }
  0x1f   : > { %p36_p12 = scmp.ge.s32.totalorder %s35_s14, 8  ;;  %p55_p13 = scmp.eq.s32.totalorder %s1041_s26, 0 }
  0x20   : > { %p1172_p0 = por %p1122_p2, %p54_p11  ;;  %p734_p3 = scmp.lt.s32.totalorder %s1041_s26, 8 }
  0x21   : > { %s1304_s14 = smov (%p36_p12, %s35_s14), 0  ;;  %p1179_p5 = por %p55_p13, %p54_p11 }
  0x22   : > { %s272_s18 = sand.u32 1, %s1029_s23   ;;  %s42_s20 = ssub.s32 %s1037_s25, %s1304_s14 }
  0x23   : > { %p45_p7 = scmp.eq.s32.totalorder %s42_s20, 0  ;;  %s675_s27 = sshll.u32 %s272_s18, 3 }
  0x24   : > { %s676_s28 = sshll.u32 %s1037_s25, 3  ;;  %s276_s16 = scalar_lea.vmem [#allocation3], %s675_s27 }
  0x25   : > { %s1188_s9 = scalar_select %p45_p7, %s1029_s23, %s47_s11  }
  0x26   : > { %s281_s15 = scalar_lea.hbm %s1277_s0, %s676_s28  ;;  %s285_s1 = sshll.u32 %s276_s16, 4  ;;  %s286_s1 = int_to_ptr.vmem [resolvable:$true] %s285_s1 }
  0x27   : > { %s283_s2 = sshll.u32 %s281_s15, 4  ;;  %p724_p9 = pnand %p734_p3, %p1179_p5  ;;  %s284_s2 = int_to_ptr.hbm [resolvable:$true] %s283_s2 }
  0x28   : > { %s273_s3 = scalar_lea.sflag [#allocation4], %s272_s18  ;;  %294 = sbr.rel (%p1141_p8) target bundleno = 498 (0x1f2), region = 40 }
  0x29   : > { %726 = dma.hbm_to_vmem [thread:$0]  (!%p724_p9), %s284_s2, 128, %s286_s1, %s273_s3  }
  0x2a   : > { %s1200_s11 = sand.u32 (!%p1141_p8), 1, %s1025_s22  }
  0x2b   : > { %s678_s20 = sshll.u32 (!%p1141_p8), %s1200_s11, 3  ;;  %s297_s27 = scalar_lea.sflag (!%p1141_p8), [#allocation4], %s1200_s11 }
  0x2c   : > { %s300_s28 = scalar_lea.vmem (!%p1141_p8), [#allocation3], %s678_s20 }
  0x2d   : > { %1000 = dma.done.wait (%p1128_p4), %s297_s27, 128  }
  0x2e   : > { %1002 = vsyncadd (%p1128_p4), %s297_s27, 4294967168 }
  0x2f   : > { %1004 = dma.done.wait (%p1118_p1), [#allocation7], 1152  }
  0x30   : > { %1006 = vsyncadd (%p1118_p1), [#allocation7], 4294966144 }
  0x31   : > { %1008 = dma.done.wait (%p1118_p1), [#allocation10], 4096  }
  0x32   : > { %1010 = vsyncadd (%p1118_p1), [#allocation10], 4294963200  ;;  %s1216_s1 = scalar_lea.vmem [#allocation11], %s678_s20  ;;  %p683_p8 = scmp.ne.s32.totalorder %s1033_s24, 0 }
  0x34   : > { %348 = sbr.rel (%p683_p8) target bundleno = 59 (0x3b), region = 60 }
  0x39   : > { %v349_v0 = vld [vmem:[#allocation6] sm:$0xff] }
  0x3a   : > { %350 = vst [vmem:[#allocation2] sm:$0xff] %v349_v0 }
  0x3b PF: > { %v392_v1 = vld [vmem:[#allocation9 + $0xf8] sm:$0xff]  ;;  %v390_v2 = vld [vmem:[#allocation9 + $0xe8] sm:$0xff]  ;;  %vm433_vm0 = vcmask 261120   ;;  %v391_v23 = vld [vmem:[#allocation9 + $0xf0] sm:$0xff]  ;;  %v485_v55 = vlaneseq  ;;  %p686_p1 = scmp.ne.s32.totalorder %s1033_s24, 7 }
  0x3c   : > { %413 = vmatpush.msra.mxu1 %v392_v1  ;;  %v388_v3 = vld [vmem:[#allocation9 + $0xd8] sm:$0xff]  ;;  %v386_v5 = vld [vmem:[#allocation9 + $0xc8] sm:$0xff]  ;;  %v389_v24 = vld [vmem:[#allocation9 + $0xe0] sm:$0xff]  ;;  %393 = vmatpush.msra.mxu0 %v391_v23 }
  0x3d   : > { %v360_v4 = vld [vmem:[#allocation8 + $0x38] sm:$0xff]  ;;  %v358_v6 = vld [vmem:[#allocation8 + $0x28] sm:$0xff]  ;;  %v387_v25 = vld [vmem:[#allocation9 + $0xd0] sm:$0xff]  ;;  %v486_v58 = vshrl.u32 %v485_v55, 7 }
  0x3e   : > { %414 = vmatpush.msra.mxu1 %v390_v2  ;;  %469 = vmatpush.msra.mxu3 %v360_v4  ;;  %v356_v7 = vld [vmem:[#allocation8 + $0x18] sm:$0xff]  ;;  %v354_v9 = vld [vmem:[#allocation8 + $0x8] sm:$0xff]  ;;  %v359_v26 = vld [vmem:[#allocation8 + $0x30] sm:$0xff] }
  0x3f   : > { %v384_v8 = vld [vmem:[#allocation9 + $0xb8] sm:$0xff]  ;;  %v382_v10 = vld [vmem:[#allocation9 + $0xa8] sm:$0xff]  ;;  %394 = vmatpush.msra.mxu0 %v389_v24  ;;  %v385_v27 = vld [vmem:[#allocation9 + $0xc0] sm:$0xff]  ;;  %449 = vmatpush.msra.mxu2 %v359_v26  ;;  %vm490_vm1 = vcmp.lt.s32.totalorder %v486_v58, 2 }
  0x40   : > { %415 = vmatpush.msra.mxu1 %v388_v3  ;;  %470 = vmatpush.msra.mxu3 %v358_v6  ;;  %v1219_v11 = vld [vmem:[%s300_s28] sm:$0xff]  ;;  %v380_v12 = vld [vmem:[#allocation9 + $0x98] sm:$0xff]  ;;  %v357_v28 = vld [vmem:[#allocation8 + $0x20] sm:$0xff] }
  0x41   : > { %v378_v13 = vld [vmem:[#allocation9 + $0x88] sm:$0xff]  ;;  %v376_v14 = vld [vmem:[#allocation9 + $0x78] sm:$0xff]  ;;  %v352_v22 = vld [vmem:[#allocation2] sm:$0xff]  ;;  %395 = vmatpush.msra.mxu0 %v387_v25  ;;  %450 = vmatpush.msra.mxu2 %v357_v28 }
  0x42   : > { %416 = vmatpush.msra.mxu1 %v386_v5  ;;  %471 = vmatpush.msra.mxu3 %v356_v7  ;;  %v374_v15 = vld [vmem:[#allocation9 + $0x68] sm:$0xff]  ;;  %v372_v16 = vld [vmem:[#allocation9 + $0x58] sm:$0xff]  ;;  %v355_v29 = vld [vmem:[#allocation8 + $0x10] sm:$0xff] }
  0x43   : > { %v370_v17 = vld [vmem:[#allocation9 + $0x48] sm:$0xff]  ;;  %v368_v18 = vld [vmem:[#allocation9 + $0x38] sm:$0xff]  ;;  %v383_v30 = vld [vmem:[#allocation9 + $0xb0] sm:$0xff]  ;;  %396 = vmatpush.msra.mxu0 %v385_v27  ;;  %451 = vmatpush.msra.mxu2 %v355_v29 }
  0x44   : > { %417 = vmatpush.msra.mxu1 %v384_v8  ;;  %472 = vmatpush.msra.mxu3 %v354_v9  ;;  %v366_v19 = vld [vmem:[#allocation9 + $0x28] sm:$0xff]  ;;  %v364_v20 = vld [vmem:[#allocation9 + $0x18] sm:$0xff]  ;;  %v381_v31 = vld [vmem:[#allocation9 + $0xa0] sm:$0xff] }
  0x45   : > { %685 = vmatmul.msk.f32.vlgmr.msra.gmra.mxu3 %vm433_vm0, %v1219_v11  ;;  %v362_v21 = vld [vmem:[#allocation9 + $0x8] sm:$0xff]  ;;  %397 = vmatpush.msra.mxu0 %v383_v30  ;;  %v379_v32 = vld [vmem:[#allocation9 + $0x90] sm:$0xff]  ;;  %v377_v33 = vld [vmem:[#allocation9 + $0x80] sm:$0xff] }
  0x46   : > { %418 = vmatpush.msra.mxu1 %v382_v10  ;;  %v375_v34 = vld [vmem:[#allocation9 + $0x70] sm:$0xff]  ;;  %v373_v35 = vld [vmem:[#allocation9 + $0x60] sm:$0xff] }
  0x47   : > { %398 = vmatpush.msra.mxu0 %v381_v31  ;;  %v371_v36 = vld [vmem:[#allocation9 + $0x50] sm:$0xff]  ;;  %v369_v37 = vld [vmem:[#allocation9 + $0x40] sm:$0xff] }
  0x48   : > { %419 = vmatpush.msra.mxu1 %v380_v12  ;;  %v477_v38 = vld [vmem:[%s1281_s4] sm:$0x3]  ;;  %v367_v44 = vld [vmem:[#allocation9 + $0x30] sm:$0xff] }
  0x49   : > { %399 = vmatpush.msra.mxu0 %v379_v32  ;;  %v480_v40 = vperm.slane %v477_v38, 1  ;;  %v353_v45 = vld [vmem:[#allocation8] sm:$0xff]  ;;  %v363_v47 = vld [vmem:[#allocation9 + $0x10] sm:$0xff]  ;;  %v479_v57 = vperm.slane %v477_v38, 0 }
  0x4a   : > { %420 = vmatpush.msra.mxu1 %v378_v13  ;;  %452 = vmatpush.msra.mxu2 %v353_v45  ;;  %v365_v46 = vld [vmem:[#allocation9 + $0x20] sm:$0xff] }
  0x4b   : > { %400 = vmatpush.msra.mxu0 %v377_v33  ;;  %684 = vmatmul.msk.f32.vlgmr.msra.gmra.mxu2 %vm433_vm0, %v1219_v11  ;;  %v361_v48 = vld [vmem:[#allocation9] sm:$0xff] }
  0x4c   : > { %421 = vmatpush.msra.mxu1 %v376_v14 }
  0x4d   : > { %401 = vmatpush.msra.mxu0 %v375_v34 }
  0x4e   : > { %422 = vmatpush.msra.mxu1 %v374_v15 }
  0x4f   : > { %402 = vmatpush.msra.mxu0 %v373_v35 }
  0x50   : > { %423 = vmatpush.msra.mxu1 %v372_v16 }
  0x51   : > { %403 = vmatpush.msra.mxu0 %v371_v36 }
  0x52   : > { %424 = vmatpush.msra.mxu1 %v370_v17 }
  0x53   : > { %404 = vmatpush.msra.mxu0 %v369_v37 }
  0x54   : > { %425 = vmatpush.msra.mxu1 %v368_v18 }
  0x55   : > { %405 = vmatpush.msra.mxu0 %v367_v44 }
  0x56   : > { %426 = vmatpush.msra.mxu1 %v366_v19 }
  0x57   : > { %406 = vmatpush.msra.mxu0 %v365_v46 }
  0x58   : > { %427 = vmatpush.msra.mxu1 %v364_v20 }
  0x59   : > { %407 = vmatpush.msra.mxu0 %v363_v47 }
  0x5a   : > { %428 = vmatpush.msra.mxu1 %v362_v21 }
  0x5b   : > { %429 = vmatmul.f32.vlgmr.msra.gmra.mxu1 %v352_v22  ;;  %408 = vmatpush.msra.mxu0 %v361_v48 }
  0x5c   : > { %409 = vmatmul.f32.vlgmr.msra.gmra.mxu0 %v352_v22 }
  0xc8   : > { %v474_v39 = vpop.f32.mrf.mxu3 }
  0xce   : > { %v454_v54 = vpop.f32.mrf.mxu2 }
  0xd8   : > { %v430_v41 = vpop.f32.mrf.mxu1 }
  0xd9   : > { %v475_v42 = vadd.f32 %v474_v39, %v430_v41  ;;  %v410_v53 = vpop.f32.mrf.mxu0 }
  0xda   : > { %v455_v56 = vadd.f32 %v454_v54, %v410_v53 }
  0xdb   : > { %v484_v43 = vadd.f32 %v480_v40, %v475_v42 }
  0xdc   : > { %v483_v59 = vadd.f32 %v479_v57, %v455_v56 }
  0xdd   : > { %495 = vmax.xlane.f32.xlu0 %v484_v43 }
  0xde   : > { %v493_v60 = vsel %vm490_vm1, %v483_v59, 0.0 }
  0xdf   : > { %494 = vst [vmem:[#allocation2] sm:$0xff] %v493_v60 }
 0x150   : > { %v496_v49 = vpop.xlane.xlu0 %495 }
 0x151   : > { %v497_v50 = vsub.f32 %v484_v43, %v496_v49 }
 0x153   : > { %v498_v51 = vmul.f32 1.442695, %v497_v50 }
 0x155   : > { %795 = vpow2.f32 %v498_v51 }
 0x15b   : > { %v796_v52 = vpop.eup %795 }
 0x15c   : > { %500 = vadd.xlane.f32.xlu0 %v796_v52 }
 0x1cf   : > { %v501_v61 = vpop.xlane.xlu0 %500 }
 0x1d0   : > { %797 = vlog2.f32 %v501_v61 }
 0x1d6   : > { %v798_v62 = vpop.eup %797 }
 0x1d7   : > { %v503_v63 = vmul.f32 0.6931472, %v798_v62  ;;  %509 = sbr.rel (%p686_p1) target bundleno = 478 (0x1de), region = 64 }
 0x1d9   : > { %v504_v0 = vsub.f32 %v497_v50, %v503_v63 }
 0x1db   : > { %505 = vst [vmem:[%s1216_s1] sm:$0xff] %v504_v0 }
 0x1dc   : > { %v510_v1 = vld [vmem:[#allocation2] sm:$0xff] }
 0x1dd   : > { %511 = vst [vmem:[#allocation12] sm:$0xff] %v510_v1 }
 0x1de PF: > { %s688_s29 = sshll.u32 %s1033_s24, 3  ;;  %s526_s18 = sshll.u32 %s1216_s1, 4  ;;  %s527_s18 = int_to_ptr.vmem [resolvable:$true] %s526_s18 }
 0x1df   : > { %s524_s19 = scalar_lea.hbm %s1282_s5, %s688_s29  ;;  %s513_s13 = scalar_lea.sflag [#allocation5], %s1200_s11 }
 0x1e0   : > { %s528_s10 = sshll.u32 %s524_s19, 4  ;;  %s939_s24 = scalar_lea.hbm %s1282_s5, 64  ;;  %s529_s10 = int_to_ptr.hbm [resolvable:$true] %s528_s10 }
 0x1e1   : > { %s933_s15 = sshra.s32 %s529_s10, 4  ;;  %s934_s15 = int_to_ptr.hbm [resolvable:$true] %s933_s15 }
 0x1e2   : > { %s935_s16 = scalar_lea.hbm %s934_s15, 8  ;;  %p940_p12 = scmp.lt.s32.totalorder %s934_s15, %s1282_s5 }
 0x1e3   : > { %p936_p4 = scmp.ne.s32.totalorder %s934_s15, %s935_s16  ;;  %p941_p13 = scmp.lt.s32.totalorder %s939_s24, %s935_s16 }
 0x1e5   : > { %p937_p10 = pnand %p936_p4, %p1172_p0  ;;  %p942_p3 = por %p941_p13, %p940_p12 }
 0x1e7   : > { %p938_p11 = pneg %p937_p10 }
 0x1e9   : > { %p943_p5 = pnand %p942_p3, %p938_p11 }
 0x1eb   : > { %946 = shalt.err (!%p943_p5)
}
 0x1ec   : > { %707 = dma.vmem_to_hbm [thread:$0]  (%p1172_p0), %s527_s18, 128, %s529_s10, %s513_s13  }
 0x1ed   : > { %s542_s3 = sshll.u32 %s1283_s6, 4  ;;  %s1048_s29 = smov [#allocation12]   ;;  %s543_s3 = int_to_ptr.hbm [resolvable:$true] %s542_s3 }
 0x1ee   : > { %s540_s7 = sshll.u32 %s1048_s29, 4  ;;  %s541_s7 = int_to_ptr.vmem [resolvable:$true] %s540_s7 }
 0x1ef   : > { %709 = dma.vmem_to_hbm [thread:$0]  (%p1122_p2), %s541_s7, 128, %s543_s3, [#allocation13]  }
 0x1f0   : > { %1012 = dma.done.wait (%p1122_p2), [#allocation13], 128  }
 0x1f1   : > { %1014 = vsyncadd (%p1122_p2), [#allocation13], 4294967168 }
 0x1f2 PF: > { %p740_p0 = scmp.ge.s32.totalorder %s1041_s26, 2  ;;  %s559_s17 = sand.u32 1, %s1021_s21  }
 0x1f3   : > { %s560_s12 = scalar_lea.sflag [#allocation5], %s559_s17 }
 0x1f4   : > { %p728_p7 = pnand %p740_p0, %p1133_p6 }
 0x1f6   : > { %p729_p9 = pneg %p728_p7 }
 0x1f8   : > { %1016 = dma.done.wait (%p729_p9), %s560_s12, 128  }
 0x1f9   : > { %1018 = vsyncadd (%p729_p9), %s560_s12, 4294967168  ;;  %s26_s26 = sadd.s32 1, %s1041_s26   ;;  %s1298_s21 = smov %s1025_s22 }
 0x1fa   : > { %p23_p8 = scmp.ge.s32.totalorder %s26_s26, 10   ;;  %s1299_s22 = smov %s1029_s23 }
 0x1fb   : > { %s1300_s23 = smov %s1188_s9  ;;  %s1301_s24 = smov %s1037_s25 }
 0x1fc   : > { %s1302_s25 = smov %s1304_s14  ;;  %25 = sbr.rel (!%p23_p8) target bundleno = 13 (0xd), region = 115 }
 0x201   :  { %566 = vsyncpa [#allocation4], 1 }
 0x202   :  { %568 = vsyncpa [#allocation4 + $0x1], 1 }
 0x203   :  { %569 = vsyncpa [#allocation7], 1 }
 0x204   :  { %570 = vsyncpa [#allocation10], 1 }
 0x205   :  { %571 = vsyncpa [#allocation5], 1 }
 0x206   :  { %573 = vsyncpa [#allocation5 + $0x1], 1 }
 0x207   :  { %574 = vsyncpa [#allocation13], 1 }

</bundles_post_ra>
